<compile_context>
chip_gen: v7x
topology: tpu7x:2x2x1
jax: 0.10.0
libtpu: 0.0.40
codegen_flags: <defaults>
</compile_context>

<pallas_src>
import functools

import jax
import jax.numpy as jnp
from jax import lax
from jax.experimental import pallas as pl
from jax.experimental.pallas import tpu as pltpu


def _label_smoothing_kernel(pred_ref, tgt_ref, out_ref, acc_ref, *,
                            n_rows, tile_n, confidence, off_value):
    i = pl.program_id(0)

    @pl.when(i == 0)
    def _():
        acc_ref[0] = jnp.float32(0.0)

    x = pred_ref[...].astype(jnp.float32)          # (TILE_N, C) compute in f32
    t = tgt_ref[...]                               # (TILE_N, 1) int32

    # Mask rows beyond the true batch size (last tile may be partially OOB).
    row = lax.broadcasted_iota(jnp.int32, (tile_n, 1), 0) + i * tile_n
    valid = row < n_rows                           # (TILE_N, 1)
    x = jnp.where(valid, x, jnp.float32(0.0))      # neutralize padded rows

    # Fused label-smoothed cross entropy:
    #   logp = x - m - lse, sum(true_dist) == 1  =>
    #   per_row = m + lse - (off*sum(x) + (confidence - off) * x[target])
    m = jnp.max(x, axis=-1, keepdims=True)                         # (T, 1)
    sum_x = jnp.sum(x, axis=-1, keepdims=True)                     # (T, 1)
    lse = jnp.log(jnp.sum(jnp.exp(x - m), axis=-1, keepdims=True))  # (T, 1)

    col = lax.broadcasted_iota(jnp.int32, x.shape, 1)              # class ids
    x_t = jnp.sum(jnp.where(col == t, x, jnp.float32(0.0)),
                  axis=-1, keepdims=True)                          # (T, 1)

    per_row = (m + lse) - (off_value * sum_x + (confidence - off_value) * x_t)
    per_row = jnp.where(valid, per_row, jnp.float32(0.0))

    acc_ref[0] += jnp.sum(per_row)

    @pl.when(i == pl.num_programs(0) - 1)
    def _():
        out_ref[0] = acc_ref[0] * jnp.float32(1.0 / n_rows)


def _choose_tile_n(n, c, itemsize):
    """Largest multiple-of-8 row tile whose pred block is <= ~4 MiB."""
    budget = 4 * 1024 * 1024
    cand = budget // max(1, c * itemsize)
    cand = max(8, min(1024, (cand // 8) * 8))
    if cand >= n:
        return n          # full batch fits in one tile (full-dim block is legal)
    return cand


def label_smoothing_loss(pred, target, *, classes, smoothing=0.0, tile_n=None):
    """Pallas equivalent of LabelSmoothingLoss(classes, smoothing)(pred, target)."""
    N, C = pred.shape
    assert C == classes
    assert classes > 1, "smoothing / (classes - 1) requires classes > 1"

    tgt = target.astype(jnp.int32).reshape(N, 1)

    if tile_n is None:
        tile_n = _choose_tile_n(N, C, pred.dtype.itemsize)
    num_tiles = -(-N // tile_n)

    kernel = functools.partial(
        _label_smoothing_kernel,
        n_rows=N,
        tile_n=tile_n,
        confidence=float(1.0 - smoothing),
        off_value=float(smoothing) / (classes - 1),
    )

    out = pl.pallas_call(
        kernel,
        out_shape=jax.ShapeDtypeStruct((1,), jnp.float32),
        grid=(num_tiles,),
        in_specs=[
            pl.BlockSpec((tile_n, C), lambda i: (i, 0)),   # pred tile (native dtype)
            pl.BlockSpec((tile_n, 1), lambda i: (i, 0)),   # target tile
        ],
        out_specs=pl.BlockSpec(memory_space=pltpu.MemorySpace.SMEM),
        scratch_shapes=[pltpu.SMEM((1,), jnp.float32)],
        compiler_params=pltpu.CompilerParams(
            dimension_semantics=("arbitrary",),           # accumulator over N tiles
            vmem_limit_bytes=32 * 1024 * 1024,
        ),
    )(pred, tgt)                                           # NOTE: no f32 upcast here
    return out[0]


def _reference_loss(pred, target, *, classes, smoothing):
    """Plain-JAX reference mirroring the PyTorch forward."""
    confidence = 1.0 - smoothing
    logp = jax.nn.log_softmax(pred.astype(jnp.float32), axis=-1)
    true_dist = jnp.full_like(logp, smoothing / (classes - 1))
    true_dist = true_dist.at[jnp.arange(pred.shape[0]), target].set(confidence)
    return jnp.mean(jnp.sum(-true_dist * logp, axis=-1))


if __name__ == "__main__":
    key = jax.random.PRNGKey(0)

    # --- case 1: small batch, single tile -------------------------------
    k1, k2, k3, k4 = jax.random.split(key, 4)
    N, C, smoothing = 8, 32, 0.1
    pred = jax.random.normal(k1, (N, C), dtype=jnp.float32)
    target = jax.random.randint(k2, (N,), 0, C, dtype=jnp.int32)

    loss = jax.block_until_ready(
        label_smoothing_loss(pred, target, classes=C, smoothing=smoothing))
    ref = jax.block_until_ready(
        _reference_loss(pred, target, classes=C, smoothing=smoothing))
    assert jnp.allclose(loss, ref, rtol=1e-5, atol=1e-5), (loss, ref)

    # --- case 2: multi-tile grid + ragged last tile (masking path) ------
    N2, C2, smoothing2 = 20, 32, 0.2
    pred2 = jax.random.normal(k3, (N2, C2), dtype=jnp.float32)
    target2 = jax.random.randint(k4, (N2,), 0, C2, dtype=jnp.int32)

    loss2 = jax.block_until_ready(
        label_smoothing_loss(pred2, target2, classes=C2, smoothing=smoothing2,
                             tile_n=8))   # forces grid=(3,), last tile padded
    ref2 = jax.block_until_ready(
        _reference_loss(pred2, target2, classes=C2, smoothing=smoothing2))
    assert jnp.allclose(loss2, ref2, rtol=1e-5, atol=1e-5), (loss2, ref2)

    print("KERNEL_OK")
</pallas_src>

<mosaic_0001>
module attributes {stable_mosaic.version = 11 : i64} {
  func.func @_label_smoothing_kernel(%arg0: i32, %arg1: memref<8x32xf32, #tpu.memory_space<vmem>>, %arg2: memref<8x1xi32, #tpu.memory_space<vmem>>, %arg3: memref<1xf32, #tpu.memory_space<smem>>, %arg4: memref<1xf32, #tpu.memory_space<smem>>) attributes {dimension_semantics = [#tpu.dimension_semantics<arbitrary>], iteration_bounds = array<i64: 1>, scalar_prefetch = 0 : i64, scratch_operands = 1 : i64, tpu.core_type = #tpu.core_type<tc>, window_params = [{transform_indices = @transform_0, window_bounds = array<i64: 8, 32>}, {transform_indices = @transform_1, window_bounds = array<i64: 8, 1>}, {transform_indices = @transform_2, window_bounds = array<i64: 1>}]} {
    %c0_i32 = arith.constant 0 : i32
    %0 = arith.cmpi eq, %arg0, %c0_i32 : i32
    %1 = arith.extui %0 : i1 to i32
    %c0_i32_0 = arith.constant 0 : i32
    %2 = arith.cmpi ne, %1, %c0_i32_0 : i32
    scf.if %2 {
      %cst_18 = arith.constant 0.000000e+00 : f32
      %c0_19 = arith.constant 0 : index
      %51 = memref.load %arg4[%c0_19] : memref<1xf32, #tpu.memory_space<smem>>
      memref.store %cst_18, %arg4[%c0_19] : memref<1xf32, #tpu.memory_space<smem>>
    } else {
    }
    %c0 = arith.constant 0 : index
    %c0_1 = arith.constant 0 : index
    %3 = vector.load %arg1[%c0, %c0_1] : memref<8x32xf32, #tpu.memory_space<vmem>>, vector<8x32xf32>
    %c0_2 = arith.constant 0 : index
    %c0_3 = arith.constant 0 : index
    %4 = vector.load %arg2[%c0_2, %c0_3] : memref<8x1xi32, #tpu.memory_space<vmem>>, vector<8x1xi32>
    %5 = tpu.iota {dimensions = array<i32: 0>} : vector<8x1xi32>
    %c8_i32 = arith.constant 8 : i32
    %6 = arith.muli %arg0, %c8_i32 : i32
    %7 = vector.broadcast %6 : i32 to vector<8x1xi32>
    %8 = arith.addi %5, %7 : vector<8x1xi32>
    %c8_i32_4 = arith.constant 8 : i32
    %9 = vector.broadcast %c8_i32_4 : i32 to vector<8x1xi32>
    %10 = arith.cmpi slt, %8, %9 : vector<8x1xi32>
    %cst = arith.constant 0.000000e+00 : f32
    %11 = vector.shape_cast %10 : vector<8x1xi1> to vector<8x1xi1>
    %12 = vector.broadcast %11 : vector<8x1xi1> to vector<8x32xi1>
    %13 = vector.broadcast %cst : f32 to vector<8x32xf32>
    %14 = arith.select %12, %3, %13 : vector<8x32xi1>, vector<8x32xf32>
    %cst_5 = arith.constant dense<0xFF800000> : vector<8xf32>
    %15 = vector.multi_reduction <maximumf>, %14, %cst_5 [1] : vector<8x32xf32> to vector<8xf32>
    %16 = vector.shape_cast %15 : vector<8xf32> to vector<8x1xf32>
    %cst_6 = arith.constant dense<0.000000e+00> : vector<8xf32>
    %17 = vector.multi_reduction <add>, %14, %cst_6 [1] : vector<8x32xf32> to vector<8xf32>
    %18 = vector.shape_cast %17 : vector<8xf32> to vector<8x1xf32>
    %19 = vector.broadcast %16 : vector<8x1xf32> to vector<8x32xf32>
    %20 = arith.subf %14, %19 : vector<8x32xf32>
    %21 = math.exp %20 : vector<8x32xf32>
    %cst_7 = arith.constant dense<0.000000e+00> : vector<8xf32>
    %22 = vector.multi_reduction <add>, %21, %cst_7 [1] : vector<8x32xf32> to vector<8xf32>
    %23 = vector.shape_cast %22 : vector<8xf32> to vector<8x1xf32>
    %24 = math.log %23 : vector<8x1xf32>
    %25 = tpu.iota {dimensions = array<i32: 1>} : vector<8x32xi32>
    %26 = vector.broadcast %4 : vector<8x1xi32> to vector<8x32xi32>
    %27 = arith.cmpi eq, %25, %26 : vector<8x32xi32>
    %cst_8 = arith.constant 0.000000e+00 : f32
    %28 = vector.broadcast %cst_8 : f32 to vector<8x32xf32>
    %29 = arith.select %27, %14, %28 : vector<8x32xi1>, vector<8x32xf32>
    %cst_9 = arith.constant dense<0.000000e+00> : vector<8xf32>
    %30 = vector.multi_reduction <add>, %29, %cst_9 [1] : vector<8x32xf32> to vector<8xf32>
    %31 = vector.shape_cast %30 : vector<8xf32> to vector<8x1xf32>
    %32 = arith.addf %16, %24 : vector<8x1xf32>
    %cst_10 = arith.constant 0.0032258064 : f32
    %33 = vector.broadcast %cst_10 : f32 to vector<8x1xf32>
    %34 = arith.mulf %33, %18 : vector<8x1xf32>
    %cst_11 = arith.constant 0.896774172 : f32
    %35 = vector.broadcast %cst_11 : f32 to vector<8x1xf32>
    %36 = arith.mulf %35, %31 : vector<8x1xf32>
    %37 = arith.addf %34, %36 : vector<8x1xf32>
    %38 = arith.subf %32, %37 : vector<8x1xf32>
    %cst_12 = arith.constant 0.000000e+00 : f32
    %39 = vector.broadcast %cst_12 : f32 to vector<8x1xf32>
    %40 = arith.select %10, %38, %39 : vector<8x1xi1>, vector<8x1xf32>
    %c0_13 = arith.constant 0 : index
    %41 = memref.load %arg4[%c0_13] : memref<1xf32, #tpu.memory_space<smem>>
    %42 = vector.shape_cast %40 : vector<8x1xf32> to vector<1x8x1xf32>
    %cst_14 = arith.constant dense<0.000000e+00> : vector<1xf32>
    %43 = vector.multi_reduction <add>, %42, %cst_14 [1, 2] : vector<1x8x1xf32> to vector<1xf32>
    %44 = vector.shape_cast %43 : vector<1xf32> to vector<1x1x1xf32>
    %45 = vector.extract %44[0, 0, 0] : f32 from vector<1x1x1xf32>
    %46 = arith.addf %41, %45 : f32
    %c0_15 = arith.constant 0 : index
    %47 = memref.load %arg4[%c0_15] : memref<1xf32, #tpu.memory_space<smem>>
    memref.store %46, %arg4[%c0_15] : memref<1xf32, #tpu.memory_space<smem>>
    %c0_i32_16 = arith.constant 0 : i32
    %48 = arith.cmpi eq, %arg0, %c0_i32_16 : i32
    %49 = arith.extui %48 : i1 to i32
    %c0_i32_17 = arith.constant 0 : i32
    %50 = arith.cmpi ne, %49, %c0_i32_17 : i32
    scf.if %50 {
      %c0_18 = arith.constant 0 : index
      %51 = memref.load %arg4[%c0_18] : memref<1xf32, #tpu.memory_space<smem>>
      %cst_19 = arith.constant 1.250000e-01 : f32
      %52 = arith.mulf %51, %cst_19 : f32
      %c0_20 = arith.constant 0 : index
      %53 = memref.load %arg3[%c0_20] : memref<1xf32, #tpu.memory_space<smem>>
      memref.store %52, %arg3[%c0_20] : memref<1xf32, #tpu.memory_space<smem>>
    } else {
    }
    return
  }
  func.func @transform_0(%arg0: i32) -> (i32, i32) {
    %c0_i32 = arith.constant 0 : i32
    %c0_i32_0 = arith.constant 0 : i32
    return %arg0, %c0_i32 : i32, i32
  }
  func.func @transform_1(%arg0: i32) -> (i32, i32) {
    %c0_i32 = arith.constant 0 : i32
    %c0_i32_0 = arith.constant 0 : i32
    return %arg0, %c0_i32 : i32, i32
  }
  func.func @transform_2(%arg0: i32) -> i32 {
    %c0_i32 = arith.constant 0 : i32
    %c0_i32_0 = arith.constant 0 : i32
    return %c0_i32 : i32
  }
}

</mosaic_0001>

<bundles_post_ra>
// kernel: tpu_custom_call.1
= control target key start
LH: loop header
LB: loop body
LE: loop exit
PB: predicated region body
PF: predicated region fallthrough
CT: control target
= control target key end

     0   :  { %vm29_vm0 = vcmask 261120   ;;  %s155_s0 = inlined_call_operand.vmem [shape: f32[8,32], index: 0, kind: input, shape index: {}]   ;;  %s156_s1 = inlined_call_operand.vmem [shape: s32[8,1], index: 1, kind: input, shape index: {}]   ;;  %s157_s2 = inlined_call_operand.hbm [shape: f32[1], index: 2, kind: output, shape index: {}]  }
   0x1   :  { %v18_v0 = vld [vmem:[%s155_s0] sm:$0xff] }
   0x2   :  { %7 = vsyncpa [#allocation4], 0  ;;  %v30_v1 = vsel %vm29_vm0, %v18_v0, -inf  ;;  %v116_v2 = vmov 0   ;;  %v19_v3 = vld [vmem:[%s156_s1] sm:$0xff]  ;;  %v44_v7 = vlaneseq  ;;  %v33_v12 = vsel %vm29_vm0, %v18_v0, 0.0 }
   0x3   :  { %99 = vset.pattern.permute.xlu0 %v116_v2  ;;  %vm61_vm2 = vcmask 7168   ;;  %s104_s15 = scalar_lea.hbm %s157_s2, 16 }
   0x4   :  { %31 = vmax.xlane.f32.xlu0 %v30_v1  ;;  %v45_v8 = vand.u32 127, %v44_v7  ;;  %p105_p0 = scmp.ne.s32.totalorder %s157_s2, %s104_s15  ;;  %p108_p1 = scmp.lt.u32.totalorder %s104_s15, %s157_s2 }
   0x6   :  { %p110_p2 = pnand %p108_p1, %p105_p0 }
  0x1a   :  { %47 = vperm.xlu0 %99, %v19_v3  }
  0x91   :  { %v32_v4 = vpop.xlane.xlu0 %31 }
  0x92   :  { %v36_v5 = vsub.f32 %v18_v0, %v32_v4 }
  0x94   :  { %v37_v6 = vmul.f32 1.442695, %v36_v5 }
  0x96   :  { %100 = vpow2.f32 %v37_v6 }
  0x99   :  { %v48_v9 = vpop.permute.xlu0 %47 }
  0x9a   :  { %vm49_vm1 = vcmp.eq.s32.totalorder %v45_v8, %v48_v9 }
  0x9b   :  { %v50_v13 = vsel %vm49_vm1, %v18_v0, 0.0 }
  0x9c   :  { %v51_v14 = vsel %vm29_vm0, %v50_v13, 0.0 }
  0xa0   :  { %v101_v10 = vpop.eup %100 }
  0xa1   :  { %v39_v11 = vsel %vm29_vm0, %v101_v10, 0.0 }
  0xa2   :  { %40 = vadd.xlane.f32.xlu1 %v39_v11 }
  0xa6   :  { %34 = vadd.xlane.f32.xlu1 %v33_v12 }
  0xaa   :  { %52 = vadd.xlane.f32.xlu1 %v51_v14 }
 0x12f   :  { %v41_v15 = vpop.xlane.xlu1 %40 }
 0x130   :  { %102 = vlog2.f32 %v41_v15 }
 0x133   :  { %v35_v16 = vpop.xlane.xlu1 %34 }
 0x134   :  { %v55_v18 = vmul.f32 0.0032258064, %v35_v16 }
 0x137   :  { %v53_v17 = vpop.xlane.xlu1 %52 }
 0x138   :  { %v56_v19 = vmul.f32 0.8967742, %v53_v17 }
 0x13a   :  { %v103_v20 = vpop.eup %102  ;;  %v57_v22 = vadd.f32 %v56_v19, %v55_v18 }
 0x13b   :  { %v43_v21 = vmul.f32 0.6931472, %v103_v20 }
 0x13d   :  { %v54_v23 = vadd.f32 %v43_v21, %v32_v4 }
 0x13f   :  { %v58_v24 = vsub.f32 %v54_v23, %v57_v22 }
 0x141   :  { %v62_v25 = vsel %vm61_vm2, %v58_v24, 0.0 }
 0x142   :  { %63 = vadd.xlane.f32.xlu1 %v62_v25 }
 0x1cf   :  { %v64_v26 = vpop.xlane.xlu1 %63 }
 0x1d0   :  { %v65_v27 = vrot.slane %v64_v26, 4 }
 0x1d2   :  { %v66_v28 = vadd.f32 %v65_v27, %v64_v26 }
 0x1d4   :  { %v67_v29 = vrot.slane %v66_v28, 2 }
 0x1d6   :  { %v68_v30 = vadd.f32 %v67_v29, %v66_v28 }
 0x1d8   :  { %v69_v31 = vrot.slane %v68_v30, 1 }
 0x1da   :  { %v70_v32 = vadd.f32 %v69_v31, %v68_v30 }
 0x1dc   :  { %95 = vpush %v70_v32 }
 0x20d   :  { %s96_s0 = spop %95 }
 0x20e   :  { %s79_s1 = smul.f32 0.125, %s96_s0 }
 0x210   :  { %81 = sst [smem:[#allocation3]] %s79_s1 }
 0x211   :  { %113 = shalt.err (!%p110_p2)
}
 0x212   :  { %s117_s20 = smov [#allocation3]  }
 0x213   :  { %89 = dma.smem_to_hbm %s117_s20, 16, %s157_s2, [#allocation4]  }
 0x214   :  { %114 = dma.done.wait [#allocation4], 16  }
 0x215   :  { %115 = vsyncadd [#allocation4], 4294967280 }
 0x216   :  { %93 = sfence }
 0x217   :  { %94 = vsyncpa [#allocation4], 1 }

</bundles_post_ra>
